<compile_context>
chip_gen: v5e
topology: v5e:2x2
jax: 0.10.0
libtpu: 0.0.40
codegen_flags: <defaults>
</compile_context>

<pallas_src>
import jax
import jax.numpy as jnp
from jax.experimental import pallas as pl
from jax.experimental.pallas import tpu as pltpu

LANE = 128


def g2f_kernel(m_ref, res_ref, gamma_ref, out_ref):
    # m_ref:     (B*O, B*C)   block-diagonal mixing matrix  delta_bb' * wsum[b,o] * node_fea[c]
    # res_ref:   (B*C, T)     flattened NCHW feature map, HW lane-dense
    # gamma_ref: (B*O, 1)     per-(batch, out-channel) bias (f32)
    # out_ref:   (B*O, T)
    acc = jnp.dot(m_ref[...], res_ref[...], preferred_element_type=jnp.float32)
    feat = acc + gamma_ref[...].astype(jnp.float32)
    out_ref[...] = jnp.maximum(feat, 0.0).astype(out_ref.dtype)


def _choose_tile(HW, rows_in, rows_out, itemsize):
    """Lane-dense HW tile: VMEM-budget- and grid-step-aware."""
    # Budget for the double-buffered streaming blocks (input + output); conservative
    # enough for every generation's default scoped-VMEM limit (16 MiB v5e .. 32 MiB v7x).
    VMEM_BLOCK_BUDGET = 8 << 20
    bytes_per_lane = 2 * (rows_in + rows_out) * itemsize      # x2 for double buffering
    cap_lanes = (VMEM_BLOCK_BUDGET // bytes_per_lane) // LANE * LANE
    cap_lanes = max(LANE, min(cap_lanes, 2048))               # diminishing returns past ~2K lanes
    n_lane_blocks = pl.cdiv(HW, LANE)
    # Aim for >=4 grid steps (2 per TensorCore on v7x) whenever there is enough work.
    target_steps = 4
    tile_blocks = max(1, min(cap_lanes // LANE, pl.cdiv(n_lane_blocks, target_steps)))
    tile_hw = tile_blocks * LANE
    HWp = pl.cdiv(HW, tile_hw) * tile_hw                      # pad -> every block full & unmasked
    return tile_hw, HWp


def graph_to_featuremaps(inp, res_feature, node_fea, weight):
    """inp: (1, B, N, Hd) ; res_feature: (B, C, h, w) ; returns (B, C, h, w)."""
    if inp.ndim == 3:  # mirror the PyTorch unsqueeze(0) fallback
        inp = inp[None]
    _, B, N, Hd = inp.shape
    Bi, C, h, w = res_feature.shape
    assert B == Bi
    HW = h * w
    O = weight.shape[1]
    assert O == C, "final .view(res_feature.size()) requires output_channels == channels"

    # ---------- tiny HW-invariant precompute, hoisted out of the per-tile kernel ----------
    inp3 = inp[0].astype(jnp.float32)                     # (B, N, Hd)
    nf_res = node_fea[:C, 0].astype(jnp.float32)          # (C,)
    nf_inp = node_fea[C:, 0].astype(jnp.float32)          # (Hd,)
    w32 = weight.astype(jnp.float32)                      # (Hd, O)

    new_weight = jnp.einsum('bnk,ko->bno', inp3, w32)     # (B, N, O)
    beta = jnp.einsum('bnk,k->bn', inp3, nf_inp)          # (B, N)
    wsum = jnp.sum(new_weight, axis=1)                    # (B, O)
    gamma = jnp.einsum('bn,bno->bo', beta, new_weight)    # (B, O)

    # Fold batch into the sublane dim (C=O typically < 8): the per-pixel contraction
    #   out[(b,o), p] = sum_{(b',c)} M[(b,o),(b',c)] * res[(b',c), p] + gamma[(b,o)]
    # with block-diagonal M[(b,o),(b,c)] = wsum[b,o] * node_fea[c] is one small matmul.
    eyeB = jnp.eye(B, dtype=jnp.float32)
    M = (wsum[:, :, None, None] * eyeB[:, None, :, None] * nf_res[None, None, None, :]
         ).reshape(B * O, B * C)                          # (B*O, B*C)

    stream_dtype = res_feature.dtype
    M = M.astype(stream_dtype)
    gamma_flat = gamma.reshape(B * O, 1)                  # stays f32 for the bias add

    res_flat = res_feature.reshape(B * C, HW)             # sublane-dense: no C->8 padding

    tile_hw, HWp = _choose_tile(HW, B * C, B * O, res_feature.dtype.itemsize)
    if HWp != HW:
        res_flat = jnp.pad(res_flat, ((0, 0), (0, HWp - HW)))
    grid = (HWp // tile_hw,)

    out = pl.pallas_call(
        g2f_kernel,
        out_shape=jax.ShapeDtypeStruct((B * O, HWp), res_feature.dtype),
        grid_spec=pltpu.PrefetchScalarGridSpec(
            num_scalar_prefetch=0,
            grid=grid,
            in_specs=[
                pl.BlockSpec((B * O, B * C), lambda t: (0, 0)),      # M (tiny, resident)
                pl.BlockSpec((B * C, tile_hw), lambda t: (0, t)),    # streamed feature map
                pl.BlockSpec((B * O, 1), lambda t: (0, 0)),          # gamma (tiny, resident)
            ],
            out_specs=pl.BlockSpec((B * O, tile_hw), lambda t: (0, t)),
        ),
        compiler_params=pltpu.CompilerParams(
            dimension_semantics=("parallel",),
            vmem_limit_bytes=32 << 20,
        ),
    )(M, res_flat, gamma_flat)

    if HWp != HW:
        out = out[:, :HW]
    # (B*O, HW) -> (B, C, h, w), matching torch's transpose(2,3).view(...)
    return out.reshape(B, C, h, w)


def graph_to_featuremaps_ref(inp, res_feature, node_fea, weight):
    """Pure-JAX reference matching the PyTorch forward literally."""
    _, B, N, Hd = inp.shape
    Bi, C, h, w = res_feature.shape
    HW = h * w
    input1 = jnp.broadcast_to(jnp.transpose(inp, (1, 0, 2, 3)), (B, HW, N, Hd))
    rf = jnp.transpose(res_feature.reshape(B, C, HW), (0, 2, 1))         # (B, HW, C)
    rf1 = jnp.broadcast_to(rf[:, :, None, :], (B, HW, N, C))
    new_fea = jnp.concatenate((rf1, input1), axis=3)                     # (B, HW, N, C+Hd)
    new_node = jnp.matmul(new_fea, node_fea)[..., 0]                     # (B, HW, N)
    new_weight = jnp.matmul(inp, weight)                                 # (1, B, N, O)
    feature_out = jnp.matmul(new_node[None], new_weight)                 # (1, B, HW, O)
    feature_out = jnp.transpose(feature_out, (0, 1, 3, 2)).reshape(res_feature.shape)
    return jax.nn.relu(feature_out)


if __name__ == "__main__":
    # Small shapes consistent with the module.
    batch, channels, h, w = 2, 4, 16, 16
    nodes, hidden = 7, 32
    output_channels = channels  # required by the final view()

    key = jax.random.PRNGKey(0)
    k1, k2, k3, k4 = jax.random.split(key, 4)

    inp = jax.random.normal(k1, (1, batch, nodes, hidden), dtype=jnp.float32)
    res_feature = jax.random.normal(k2, (batch, channels, h, w), dtype=jnp.float32)

    # Deterministic xavier-uniform-like init for parameters.
    def xavier_uniform(k, shape):
        fan_in, fan_out = shape[0], shape[1]
        bound = (6.0 / (fan_in + fan_out)) ** 0.5
        return jax.random.uniform(k, shape, jnp.float32, -bound, bound)

    node_fea = xavier_uniform(k3, (channels + hidden, 1))
    weight = xavier_uniform(k4, (hidden, output_channels))

    out = graph_to_featuremaps(inp, res_feature, node_fea, weight)
    out = jax.block_until_ready(out)

    ref = graph_to_featuremaps_ref(inp, res_feature, node_fea, weight)
    assert out.shape == res_feature.shape
    # Rank-1 rewrite changes fp summation order -> tolerance check, not bitwise.
    assert jnp.allclose(out, ref, rtol=1e-4, atol=1e-4), "mismatch vs reference"

    print("KERNEL_OK")
</pallas_src>

<mosaic_0001>
module attributes {stable_mosaic.version = 11 : i64} {
  func.func @g2f_kernel(%arg0: i32, %arg1: memref<8x8xf32, #tpu.memory_space<vmem>>, %arg2: memref<8x128xf32, #tpu.memory_space<vmem>>, %arg3: memref<8x1xf32, #tpu.memory_space<vmem>>, %arg4: memref<8x128xf32, #tpu.memory_space<vmem>>) attributes {dimension_semantics = [#tpu.dimension_semantics<parallel>], iteration_bounds = array<i64: 2>, scalar_prefetch = 0 : i64, scratch_operands = 0 : i64, tpu.core_type = #tpu.core_type<tc>, window_params = [{pipeline_mode = #tpu.pipeline_mode<synchronous>, transform_indices = @transform_0, window_bounds = array<i64: 8, 8>}, {transform_indices = @transform_1, window_bounds = array<i64: 8, 128>}, {pipeline_mode = #tpu.pipeline_mode<synchronous>, transform_indices = @transform_2, window_bounds = array<i64: 8, 1>}, {transform_indices = @transform_3, window_bounds = array<i64: 8, 128>}]} {
    %c0 = arith.constant 0 : index
    %c0_0 = arith.constant 0 : index
    %0 = vector.load %arg1[%c0, %c0_0] : memref<8x8xf32, #tpu.memory_space<vmem>>, vector<8x8xf32>
    %c0_1 = arith.constant 0 : index
    %c0_2 = arith.constant 0 : index
    %1 = vector.load %arg2[%c0_1, %c0_2] : memref<8x128xf32, #tpu.memory_space<vmem>>, vector<8x128xf32>
    %cst = arith.constant dense<0.000000e+00> : vector<8x128xf32>
    %2 = tpu.matmul %0, %1, %cst {dimension_numbers = #tpu.dot_dimension_numbers<[1], [0], [0], [1], [0, 0, 1, 1], [], []>} : vector<8x8xf32>, vector<8x128xf32>, vector<8x128xf32> -> vector<8x128xf32>
    %c0_3 = arith.constant 0 : index
    %c0_4 = arith.constant 0 : index
    %3 = vector.load %arg3[%c0_3, %c0_4] : memref<8x1xf32, #tpu.memory_space<vmem>>, vector<8x1xf32>
    %4 = vector.broadcast %3 : vector<8x1xf32> to vector<8x128xf32>
    %5 = arith.addf %2, %4 : vector<8x128xf32>
    %cst_5 = arith.constant 0.000000e+00 : f32
    %6 = vector.broadcast %cst_5 : f32 to vector<8x128xf32>
    %7 = arith.maximumf %5, %6 : vector<8x128xf32>
    %c0_6 = arith.constant 0 : index
    %c0_7 = arith.constant 0 : index
    %8 = vector.load %arg4[%c0_6, %c0_7] : memref<8x128xf32, #tpu.memory_space<vmem>>, vector<8x128xf32>
    tpu.vector_store %arg4[%c0_6, %c0_7], %7 {strides = array<i32>} : memref<8x128xf32, #tpu.memory_space<vmem>>, vector<8x128xf32>,
    return
  }
  func.func @transform_0(%arg0: i32) -> (i32, i32) {
    %c0_i32 = arith.constant 0 : i32
    %c0_i32_0 = arith.constant 0 : i32
    %c0_i32_1 = arith.constant 0 : i32
    return %c0_i32, %c0_i32_0 : i32, i32
  }
  func.func @transform_1(%arg0: i32) -> (i32, i32) {
    %c0_i32 = arith.constant 0 : i32
    %c0_i32_0 = arith.constant 0 : i32
    return %c0_i32, %arg0 : i32, i32
  }
  func.func @transform_2(%arg0: i32) -> (i32, i32) {
    %c0_i32 = arith.constant 0 : i32
    %c0_i32_0 = arith.constant 0 : i32
    %c0_i32_1 = arith.constant 0 : i32
    return %c0_i32, %c0_i32_0 : i32, i32
  }
  func.func @transform_3(%arg0: i32) -> (i32, i32) {
    %c0_i32 = arith.constant 0 : i32
    %c0_i32_0 = arith.constant 0 : i32
    return %c0_i32, %arg0 : i32, i32
  }
}

</mosaic_0001>

<bundles_post_ra>
// kernel: tpu_custom_call.1
= control target key start
LH: loop header
LB: loop body
LE: loop exit
PB: predicated region body
PF: predicated region fallthrough
CT: control target
= control target key end

     0   :  { %8 = vsyncpa [#allocation3], 0  ;;  %s621_s0 = inlined_call_operand.vmem [shape: f32[8,8], index: 0, kind: input, shape index: {}]   ;;  %s622_s1 = inlined_call_operand.hbm [shape: f32[8,256], index: 1, kind: input, shape index: {}]   ;;  %s623_s2 = inlined_call_operand.vmem [shape: f32[8,1], index: 2, kind: input, shape index: {}]   ;;  %s624_s3 = inlined_call_operand.hbm [shape: f32[8,256], index: 3, kind: output, shape index: {}]  }
   0x1   :  { %10 = vsyncpa [#allocation3 + $0x1], 0 }
   0x2   :  { %11 = vsyncpa [#allocation4], 0 }
   0x3   :  { %13 = vsyncpa [#allocation4 + $0x1], 0  ;;  %s488_s12 = smov 0   ;;  %s490_s13 = smov 0  }
   0x4   :  { %s492_s14 = smov 0   ;;  %s494_s15 = smov 0  }
   0x5 LB: > { %s509_s16 = sadd.s32 4294967295, %s465_s15   ;;  %s308_s17 = sadd.s32 4294967294, %s465_s15   ;;  %s465_s15 = sphi %s494_s15, %s634_s15   ;;  %s461_s14 = sphi %s492_s14, %s633_s14   ;;  %s457_s13 = sphi %s490_s13, %s632_s13   ;;  %s453_s12 = sphi %s488_s12, %s631_s12  }
   0x6   : > { %s513_s18 = sadd.s32 1, %s465_s15   ;;  %s47_s19 = sadd.s32 1, %s461_s14 }
   0x7   : > { %s44_s20 = ssub.s32 %s465_s15, %s513_s18  ;;  %p54_p0 = scmp.ne.s32.totalorder %s461_s14, %s457_s13 }
   0x8   : > { %p45_p1 = scmp.eq.s32.totalorder %s44_s20, 0  ;;  %p55_p2 = scmp.eq.s32.totalorder %s465_s15, 0 }
   0x9   : > { %p60_p3 = scmp.ne.s32.totalorder %s457_s13, %s453_s12  ;;  %p61_p4 = scmp.eq.s32.totalorder %s509_s16, 0 }
   0xa   : > { %s525_s21 = scalar_select %p45_p1, %s461_s14, %s47_s19  }
   0xb   : > { %p527_p5 = por %p55_p2, %p54_p0  ;;  %p531_p6 = por %p61_p4, %p60_p3 }
   0xc   : > { %p105_p7 = scmp.eq.s32.totalorder %s509_s16, 1  ;;  %p111_p8 = scmp.eq.s32.totalorder %s308_s17, 1 }
   0xd   : > { %p333_p10 = scmp.lt.s32.totalorder %s465_s15, 2  ;;  %s137_s26 = sand.u32 1, %s461_s14  }
   0xe   : > { %p538_p11 = por %p105_p7, %p54_p0  ;;  %p542_p12 = por %p111_p8, %p60_p3 }
   0xf   : > { %s312_s27 = sshll.u32 %s465_s15, 3  ;;  %s311_s28 = sshll.u32 %s137_s26, 3 }
  0x10   : > { %s145_s4 = scalar_lea.hbm %s622_s1, %s312_s27  ;;  %s141_s6 = scalar_lea.vmem [#allocation2], %s311_s28 }
  0x11   : > { %s147_s5 = sshll.u32 %s145_s4, 4  ;;  %s149_s7 = sshll.u32 %s141_s6, 4  ;;  %s148_s5 = int_to_ptr.hbm [resolvable:$true] %s147_s5  ;;  %s150_s7 = int_to_ptr.vmem [resolvable:$true] %s149_s7 }
  0x12   : > { %p553_p13 = pnand %p333_p10, %p527_p5  ;;  %p313_p0 = scmp.ge.s32.totalorder %s465_s15, 1 }
  0x13   : > { %p154_p1 = scmp.lt.s32.totalorder %s465_s15, 3  ;;  %s138_s9 = scalar_lea.sflag [#allocation3], %s137_s26 }
  0x14   : > { %s369_s10 = sshra.s32 %s148_s5, 4  ;;  %p373_p3 = pneg %p553_p13  ;;  %s370_s10 = int_to_ptr.hbm [resolvable:$true] %s369_s10 }
  0x15   : > { %s371_s11 = scalar_lea.hbm %s370_s10, 8  ;;  %s376_s20 = scalar_lea.hbm %s622_s1, 16 }
  0x16   : > { %p372_p2 = scmp.ne.s32.totalorder %s370_s10, %s371_s11  ;;  %p377_p5 = scmp.lt.s32.totalorder %s370_s10, %s622_s1 }
  0x17   : > { %p378_p8 = scmp.lt.s32.totalorder %s376_s20, %s371_s11 }
  0x18   : > { %p374_p4 = pnand %p373_p3, %p372_p2 }
  0x19   : > { %p379_p10 = por %p378_p8, %p377_p5 }
  0x1a   : > { %p375_p7 = pneg %p374_p4 }
  0x1c   : > { %p380_p9 = pnand %p379_p10, %p375_p7 }
  0x1e   : > { %383 = shalt.err (!%p380_p9)
}
  0x1f   : > { %328 = dma.hbm_to_vmem [thread:$0]  (!%p553_p13), %s148_s5, 128, %s150_s7, %s138_s9  }
  0x20   : > { %p155_p2 = pnand %p313_p0, %p154_p1 }
  0x21   : > { %s574_s26 = sand.u32 (!%p155_p2), 1, %s457_s13  }
  0x22   : > { %158 = sbr.rel (%p155_p2) target bundleno = 175 (0xaf), region = 32  ;;  %s314_s28 = sshll.u32 (!%p155_p2), %s574_s26, 3 }
  0x23   : > { %s161_s29 = scalar_lea.sflag (!%p155_p2), [#allocation3], %s574_s26  ;;  %s164_s30 = scalar_lea.vmem (!%p155_p2), [#allocation2], %s314_s28 }
  0x27   : > { %444 = dma.done.wait (%p531_p6), %s161_s29, 128  }
  0x28   : > { %446 = vsyncadd (%p531_p6), %s161_s29, 4294967168  ;;  %v467_v0 = vmov 0   ;;  %vm196_vm0 = vcmask 64512   ;;  %v189_v1 = vld [vmem:[%s164_s30] sm:$0xff]  ;;  %s318_s8 = sshll.u32 %s509_s16, 3  ;;  %s187_s11 = scalar_lea.vmem [#allocation5], %s314_s28 }
  0x29   : > { %368 = vset.pattern.permute.xlu0 %v467_v0  ;;  %v188_v2 = vld [vmem:[%s621_s0] sm:$0xff]  ;;  %215 = vmatpush.msra.mxu0 %v189_v1  ;;  %s233_s10 = scalar_lea.hbm %s624_s3, %s318_s8  ;;  %s235_s17 = sshll.u32 %s187_s11, 4  ;;  %s236_s17 = int_to_ptr.vmem [resolvable:$true] %s235_s17 }
  0x2a   : > { %v190_v3 = vld [vmem:[%s623_s2] sm:$0xff]  ;;  %316 = vmatmul.msk.f32.vlgmr.msra.gmra.mxu0 %vm196_vm0, %v188_v2  ;;  %s237_s19 = sshll.u32 %s233_s10, 4  ;;  %s223_s20 = scalar_lea.sflag [#allocation4], %s574_s26  ;;  %s238_s19 = int_to_ptr.hbm [resolvable:$true] %s237_s19 }
  0x2b   : > { %193 = vperm.xlu0 %368, %v190_v3   ;;  %s413_s22 = sshra.s32 %s238_s19, 4  ;;  %s419_s30 = scalar_lea.hbm %s624_s3, 16  ;;  %s414_s22 = int_to_ptr.hbm [resolvable:$true] %s413_s22 }
  0x2c   : > { %s415_s27 = scalar_lea.hbm %s414_s22, 8  ;;  %p420_p0 = scmp.lt.s32.totalorder %s414_s22, %s624_s3 }
  0x2d   : > { %p416_p6 = scmp.ne.s32.totalorder %s414_s22, %s415_s27  ;;  %p421_p1 = scmp.lt.s32.totalorder %s419_s30, %s415_s27 }
  0x2f   : > { %p417_p9 = pnand %p416_p6, %p538_p11  ;;  %p422_p3 = por %p421_p1, %p420_p0 }
  0x31   : > { %p418_p13 = pneg %p417_p9 }
  0x33   : > { %p423_p4 = pnand %p422_p3, %p418_p13 }
  0x9d   : > { %v194_v4 = vpop.permute.xlu0 %193 }
  0xa7   : > { %v217_v5 = vpop.f32.mrf.mxu0 }
  0xa8   : > { %v218_v6 = vadd.f32 %v217_v5, %v194_v4 }
  0xaa   : > { %v220_v7 = vmax.f32 %v218_v6, 0.0 }
  0xac   : > { %221 = vst [vmem:[%s187_s11] sm:$0xff] %v220_v7 }
  0xad   : > { %426 = shalt.err (!%p423_p4)
}
  0xae   : > { %323 = dma.vmem_to_hbm [thread:$0]  (%p538_p11), %s236_s17, 128, %s238_s19, %s223_s20  }
  0xaf PF: > { %s249_s26 = sand.u32 1, %s453_s12   ;;  %p630_p7 = scmp.ge.s32.totalorder %s465_s15, 2 }
  0xb0   : > { %s250_s5 = scalar_lea.sflag [#allocation4], %s249_s26 }
  0xb1   : > { %p330_p5 = pnand %p630_p7, %p542_p12 }
  0xb3   : > { %p331_p8 = pneg %p330_p5 }
  0xb5   : > { %448 = dma.done.wait (%p331_p8), %s250_s5, 128  }
  0xb6   : > { %450 = vsyncadd (%p331_p8), %s250_s5, 4294967168  ;;  %p16_p10 = scmp.ge.s32.totalorder %s513_s18, 4   ;;  %s631_s12 = smov %s457_s13 }
  0xb7   : > { %s632_s13 = smov %s461_s14  ;;  %s633_s14 = smov %s525_s21 }
  0xb8   : > { %s634_s15 = smov %s513_s18  ;;  %18 = sbr.rel (!%p16_p10) target bundleno = 5 (0x5), region = 77 }
  0xbd   :  { %256 = vsyncpa [#allocation3], 1 }
  0xbe   :  { %258 = vsyncpa [#allocation3 + $0x1], 1 }
  0xbf   :  { %259 = vsyncpa [#allocation4], 1 }
  0xc0   :  { %261 = vsyncpa [#allocation4 + $0x1], 1 }

</bundles_post_ra>
